<compile_context>
chip_gen: v7x
topology: tpu7x:2x2x1
jax: 0.10.0
libtpu: 0.0.40
codegen_flags: <defaults>
</compile_context>

<pallas_src>
import jax
import jax.numpy as jnp
from jax import lax
from jax.experimental import pallas as pl
from jax.experimental.pallas import tpu as pltpu


def _round_up(n, m):
    return ((n + m - 1) // m) * m


def _choose_row_tile(M, tm_target):
    """Pick (TM, M_pad): TM a multiple of 16, >=2 grid steps when possible
    (v7x dual TensorCore), padding waste capped at ~1/8 of the rows."""
    m16 = _round_up(M, 16)
    if m16 >= 32:
        tm_cap = max(16, (m16 // 2) // 16 * 16)   # leave >=2 grid steps
    else:
        tm_cap = 16
    tm = max(16, min(_round_up(tm_target, 16), tm_cap))
    max_waste = max(16, m16 // 8)
    while tm > 16 and _round_up(m16, tm) - m16 > max_waste:
        tm -= 16
    return tm, _round_up(m16, tm)


def prefix_adapter_kernel(x_ref, ids_ref, w_ref, b_ref, emb_ref, h_ref):
    # ---- main projection: (TM, D) @ (D, Hd) on the MXU, f32 accumulate ----
    # x arrives in its native dtype; cast to bf16 on the VPU (hidden under
    # DMA/MXU) instead of a separate wrapper-side cast pass over HBM.
    x = x_ref[...].astype(jnp.bfloat16)
    h = jnp.dot(x, w_ref[...], preferred_element_type=jnp.float32)  # (TM, Hd)
    h = h + b_ref[...]                                              # f32 bias

    # dropout(p=0.1) is identity in eval mode.

    # ---- segment embedding via lane-dense one-hot matmul ------------------
    # Contract: segment ids must be in [0, S). Out-of-range ids silently give
    # a zero embedding (torch.nn.Embedding would raise instead).
    ids = ids_ref[...]                                     # (TM, 1) int32
    TM = ids.shape[0]
    S = emb_ref.shape[0]
    iota = lax.broadcasted_iota(jnp.int32, (TM, S), 1)
    onehot = (iota == ids).astype(emb_ref.dtype)           # (TM, S) bf16
    seg = jnp.dot(onehot, emb_ref[...],
                  preferred_element_type=jnp.float32)      # (TM, Hd) f32

    h_ref[...] = (h + seg).astype(h_ref.dtype)             # bf16 store


def prefix_adapter_forward(x, segment_ids, chap_scores, params, *,
                           tm=512, out_dtype=jnp.bfloat16,
                           force_pallas=False, min_pallas_rows=1024):
    B, L, D = x.shape
    W_lin = params["W_lin"]          # (D, Hd)
    b_lin = params["b_lin"]          # (1, Hd)
    emb = params["segment_emb"]      # (S, Hd)
    W_score = params["W_score"]      # (score_dim, pdyn*Hd)
    b_score = params["b_score"]      # (1, pdyn*Hd)
    P_stat = params["P_stat"]        # (pstat, Hd)

    Hd = W_lin.shape[1]
    S = emb.shape[0]
    pdyn = W_score.shape[1] // Hd

    M = B * L
    x_flat = x.reshape(M, D)
    ids_flat = (None if segment_ids is None
                else segment_ids.reshape(M).astype(jnp.int32))

    if force_pallas or M >= min_pallas_rows:
        # ---- Pallas path: flattened (B*L) row tiles ------------------------
        TM, M_pad = _choose_row_tile(M, tm)

        if ids_flat is None:
            ids2d = jnp.zeros((M, 1), jnp.int32)
            emb_used = jnp.zeros_like(emb)       # segment add becomes a no-op
        else:
            ids2d = ids_flat[:, None]
            emb_used = emb

        x_in = x_flat                            # native dtype; cast in-kernel
        if M_pad > M:
            x_in = jnp.pad(x_in, ((0, M_pad - M), (0, 0)))
            ids2d = jnp.pad(ids2d, ((0, M_pad - M), (0, 0)))

        w_bf = W_lin.astype(jnp.bfloat16)
        emb_bf = emb_used.astype(jnp.bfloat16)
        b_f32 = b_lin.reshape(1, Hd).astype(jnp.float32)

        h_flat = pl.pallas_call(
            prefix_adapter_kernel,
            out_shape=jax.ShapeDtypeStruct((M_pad, Hd), out_dtype),
            grid=(M_pad // TM,),
            in_specs=[
                pl.BlockSpec((TM, D), lambda m: (m, 0)),   # x (native dtype)
                pl.BlockSpec((TM, 1), lambda m: (m, 0)),   # segment ids
                pl.BlockSpec((D, Hd), lambda m: (0, 0)),   # W_lin (invariant)
                pl.BlockSpec((1, Hd), lambda m: (0, 0)),   # b_lin (invariant)
                pl.BlockSpec((S, Hd), lambda m: (0, 0)),   # seg emb (invariant)
            ],
            out_specs=pl.BlockSpec((TM, Hd), lambda m: (m, 0)),
            compiler_params=pltpu.CompilerParams(
                dimension_semantics=("parallel",)),
        )(x_in, ids2d, w_bf, b_f32, emb_bf)

        H = h_flat[:M].reshape(B, L, Hd)
    else:
        # ---- small-M fast path: launch overhead dominates, let XLA fuse ----
        H = x_flat @ W_lin + b_lin
        if ids_flat is not None:
            H = H + emb[ids_flat]
        H = H.reshape(B, L, Hd)

    # ---- dynamic prefix: single batched GEMM in plain JAX ------------------
    if chap_scores is not None:
        pooled = chap_scores.mean(axis=1)                       # (B, score_dim)
        P_dyn = (pooled @ W_score + b_score).reshape(B, pdyn, Hd)
    else:
        P_dyn = jnp.zeros((B, pdyn, Hd), jnp.float32)

    P_stat_b = jnp.broadcast_to(P_stat[None], (B,) + P_stat.shape)
    # result = cat([P_stat, P_dyn, H], dim=1); bf16 H promotes back to f32.
    return jnp.concatenate([P_stat_b, P_dyn, H.astype(P_stat.dtype)], axis=1)


def reference_forward(x, segment_ids, chap_scores, params):
    B, L, D = x.shape
    Hd = params["W_lin"].shape[1]
    pdyn = params["W_score"].shape[1] // Hd
    H = x @ params["W_lin"] + params["b_lin"]
    if segment_ids is not None:
        H = H + params["segment_emb"][segment_ids]
    if chap_scores is not None:
        pooled = chap_scores.mean(axis=1)
        P_dyn = (pooled @ params["W_score"] + params["b_score"]).reshape(B, pdyn, Hd)
    else:
        P_dyn = jnp.zeros((B, pdyn, Hd), jnp.float32)
    P_stat = jnp.broadcast_to(params["P_stat"][None],
                              (B,) + params["P_stat"].shape)
    return jnp.concatenate([P_stat, P_dyn, H], axis=1)


if __name__ == "__main__":
    # Small shapes consistent with the module's forward.
    B, L, D = 2, 8, 64              # batch, seq len, input_dim
    Hd = 128                        # hidden_dim
    num_segments = 8
    prefix_static_len = 10
    prefix_dyn_len = 2
    score_dim = 2
    num_chapters = 4

    key = jax.random.PRNGKey(0)
    ks = jax.random.split(key, 12)

    params = {
        "P_stat": jax.random.normal(ks[0], (prefix_static_len, Hd),
                                    jnp.float32) * 0.02,
        "W_lin": jax.random.normal(ks[1], (D, Hd), jnp.float32) * 0.02,
        "b_lin": jax.random.normal(ks[2], (1, Hd), jnp.float32) * 0.02,
        "segment_emb": jax.random.normal(ks[3], (num_segments, Hd),
                                         jnp.float32) * 0.02,
        "W_score": jax.random.normal(ks[4], (score_dim, prefix_dyn_len * Hd),
                                     jnp.float32) * 0.02,
        "b_score": jax.random.normal(ks[5], (1, prefix_dyn_len * Hd),
                                     jnp.float32) * 0.02,
    }

    x = jax.random.normal(ks[6], (B, L, D), jnp.float32)
    segment_ids = jax.random.randint(ks[7], (B, L), 0, num_segments)
    chap_scores = jax.random.normal(ks[8], (B, num_chapters, score_dim),
                                    jnp.float32)

    ref = reference_forward(x, segment_ids, chap_scores, params)

    # 1) Small shape, forcing the Pallas path so the kernel is exercised.
    out = prefix_adapter_forward(x, segment_ids, chap_scores, params,
                                 force_pallas=True)
    out = jax.block_until_ready(out)
    assert out.shape == (B, prefix_static_len + prefix_dyn_len + L, Hd), out.shape
    # bf16 matmul inputs / bf16 output vs f32 reference: loose tolerance.
    assert jnp.allclose(out, ref, atol=1e-2, rtol=1e-2), "pallas mismatch"

    # 2) Small-M auto path (jnp fast path below the row threshold).
    out_fast = jax.block_until_ready(
        prefix_adapter_forward(x, segment_ids, chap_scores, params))
    assert jnp.allclose(out_fast, ref, atol=1e-2, rtol=1e-2), "fast-path mismatch"

    # 3) Larger M to exercise the multi-step grid + ragged-padding tiling.
    B2, L2 = 3, 400                 # M = 1200 -> TM=448, grid=3, 144 pad rows
    x2 = jax.random.normal(ks[9], (B2, L2, D), jnp.float32)
    seg2 = jax.random.randint(ks[10], (B2, L2), 0, num_segments)
    scores2 = jax.random.normal(ks[11], (B2, num_chapters, score_dim),
                                jnp.float32)
    out2 = jax.block_until_ready(
        prefix_adapter_forward(x2, seg2, scores2, params))
    ref2 = reference_forward(x2, seg2, scores2, params)
    assert out2.shape == (B2, prefix_static_len + prefix_dyn_len + L2, Hd)
    assert jnp.allclose(out2, ref2, atol=1e-2, rtol=1e-2), "tiled mismatch"

    print("KERNEL_OK")
</pallas_src>

<mosaic_0001>
module attributes {stable_mosaic.version = 11 : i64} {
  func.func @prefix_adapter_kernel(%arg0: i32, %arg1: memref<16x64xf32, #tpu.memory_space<vmem>>, %arg2: memref<16x1xi32, #tpu.memory_space<vmem>>, %arg3: memref<64x128xbf16, #tpu.memory_space<vmem>>, %arg4: memref<1x128xf32, #tpu.memory_space<vmem>>, %arg5: memref<8x128xbf16, #tpu.memory_space<vmem>>, %arg6: memref<16x128xbf16, #tpu.memory_space<vmem>>) attributes {dimension_semantics = [#tpu.dimension_semantics<parallel>], iteration_bounds = array<i64: 1>, scalar_prefetch = 0 : i64, scratch_operands = 0 : i64, tpu.core_type = #tpu.core_type<tc>, window_params = [{transform_indices = @transform_0, window_bounds = array<i64: 16, 64>}, {transform_indices = @transform_1, window_bounds = array<i64: 16, 1>}, {pipeline_mode = #tpu.pipeline_mode<synchronous>, transform_indices = @transform_2, window_bounds = array<i64: 64, 128>}, {pipeline_mode = #tpu.pipeline_mode<synchronous>, transform_indices = @transform_3, window_bounds = array<i64: 1, 128>}, {pipeline_mode = #tpu.pipeline_mode<synchronous>, transform_indices = @transform_4, window_bounds = array<i64: 8, 128>}, {transform_indices = @transform_5, window_bounds = array<i64: 16, 128>}]} {
    %c0 = arith.constant 0 : index
    %c0_0 = arith.constant 0 : index
    %0 = vector.load %arg1[%c0, %c0_0] : memref<16x64xf32, #tpu.memory_space<vmem>>, vector<16x64xf32>
    %1 = arith.truncf %0 : vector<16x64xf32> to vector<16x64xbf16>
    %c0_1 = arith.constant 0 : index
    %c0_2 = arith.constant 0 : index
    %2 = vector.load %arg3[%c0_1, %c0_2] : memref<64x128xbf16, #tpu.memory_space<vmem>>, vector<64x128xbf16>
    %cst = arith.constant dense<0.000000e+00> : vector<16x128xf32>
    %3 = tpu.matmul %1, %2, %cst {dimension_numbers = #tpu.dot_dimension_numbers<[1], [0], [0], [1], [0, 0, 1, 1], [], []>} : vector<16x64xbf16>, vector<64x128xbf16>, vector<16x128xf32> -> vector<16x128xf32>
    %c0_3 = arith.constant 0 : index
    %c0_4 = arith.constant 0 : index
    %4 = vector.load %arg4[%c0_3, %c0_4] : memref<1x128xf32, #tpu.memory_space<vmem>>, vector<1x128xf32>
    %5 = vector.broadcast %4 : vector<1x128xf32> to vector<16x128xf32>
    %6 = arith.addf %3, %5 : vector<16x128xf32>
    %c0_5 = arith.constant 0 : index
    %c0_6 = arith.constant 0 : index
    %7 = vector.load %arg2[%c0_5, %c0_6] : memref<16x1xi32, #tpu.memory_space<vmem>>, vector<16x1xi32>
    %8 = tpu.iota {dimensions = array<i32: 1>} : vector<16x8xi32>
    %9 = vector.broadcast %7 : vector<16x1xi32> to vector<16x8xi32>
    %10 = arith.cmpi eq, %8, %9 : vector<16x8xi32>
    %11 = arith.extui %10 : vector<16x8xi1> to vector<16x8xi32>
    %12 = arith.sitofp %11 : vector<16x8xi32> to vector<16x8xf32>
    %13 = arith.truncf %12 : vector<16x8xf32> to vector<16x8xbf16>
    %c0_7 = arith.constant 0 : index
    %c0_8 = arith.constant 0 : index
    %14 = vector.load %arg5[%c0_7, %c0_8] : memref<8x128xbf16, #tpu.memory_space<vmem>>, vector<8x128xbf16>
    %cst_9 = arith.constant dense<0.000000e+00> : vector<16x128xf32>
    %15 = tpu.matmul %13, %14, %cst_9 {dimension_numbers = #tpu.dot_dimension_numbers<[1], [0], [0], [1], [0, 0, 1, 1], [], []>} : vector<16x8xbf16>, vector<8x128xbf16>, vector<16x128xf32> -> vector<16x128xf32>
    %16 = arith.addf %6, %15 : vector<16x128xf32>
    %17 = arith.truncf %16 : vector<16x128xf32> to vector<16x128xbf16>
    %c0_10 = arith.constant 0 : index
    %c0_11 = arith.constant 0 : index
    %18 = vector.load %arg6[%c0_10, %c0_11] : memref<16x128xbf16, #tpu.memory_space<vmem>>, vector<16x128xbf16>
    tpu.vector_store %arg6[%c0_10, %c0_11], %17 {strides = array<i32>} : memref<16x128xbf16, #tpu.memory_space<vmem>>, vector<16x128xbf16>,
    return
  }
  func.func @transform_0(%arg0: i32) -> (i32, i32) {
    %c0_i32 = arith.constant 0 : i32
    %c0_i32_0 = arith.constant 0 : i32
    return %arg0, %c0_i32 : i32, i32
  }
  func.func @transform_1(%arg0: i32) -> (i32, i32) {
    %c0_i32 = arith.constant 0 : i32
    %c0_i32_0 = arith.constant 0 : i32
    return %arg0, %c0_i32 : i32, i32
  }
  func.func @transform_2(%arg0: i32) -> (i32, i32) {
    %c0_i32 = arith.constant 0 : i32
    %c0_i32_0 = arith.constant 0 : i32
    %c0_i32_1 = arith.constant 0 : i32
    return %c0_i32, %c0_i32_0 : i32, i32
  }
  func.func @transform_3(%arg0: i32) -> (i32, i32) {
    %c0_i32 = arith.constant 0 : i32
    %c0_i32_0 = arith.constant 0 : i32
    %c0_i32_1 = arith.constant 0 : i32
    return %c0_i32, %c0_i32_0 : i32, i32
  }
  func.func @transform_4(%arg0: i32) -> (i32, i32) {
    %c0_i32 = arith.constant 0 : i32
    %c0_i32_0 = arith.constant 0 : i32
    %c0_i32_1 = arith.constant 0 : i32
    return %c0_i32, %c0_i32_0 : i32, i32
  }
  func.func @transform_5(%arg0: i32) -> (i32, i32) {
    %c0_i32 = arith.constant 0 : i32
    %c0_i32_0 = arith.constant 0 : i32
    return %arg0, %c0_i32 : i32, i32
  }
}

</mosaic_0001>

<bundles_post_ra>
// kernel: tpu_custom_call.1
= control target key start
LH: loop header
LB: loop body
LE: loop exit
PB: predicated region body
PF: predicated region fallthrough
CT: control target
= control target key end

     0   :  { %10 = vsyncpa [#allocation3], 0  ;;  %s411_s0 = inlined_call_operand.vmem [shape: f32[16,64], index: 0, kind: input, shape index: {}]   ;;  %s412_s1 = inlined_call_operand.vmem [shape: s32[16,1], index: 1, kind: input, shape index: {}]   ;;  %s413_s2 = inlined_call_operand.hbm [shape: bf16[64,128], index: 2, kind: input, shape index: {}]   ;;  %s414_s3 = inlined_call_operand.vmem [shape: f32[1,128], index: 3, kind: input, shape index: {}]   ;;  %s415_s4 = inlined_call_operand.vmem [shape: bf16[8,128], index: 4, kind: input, shape index: {}]   ;;  %s416_s5 = inlined_call_operand.hbm [shape: bf16[16,128], index: 5, kind: output, shape index: {}]  }
   0x1   :  { %11 = vsyncpa [#allocation4], 0  ;;  %s326_s18 = smov [#allocation2]   ;;  %s278_s22 = scalar_lea.hbm %s413_s2, 512 }
   0x2   :  { %s21_s19 = sshll.u32 %s326_s18, 4  ;;  %p279_p0 = scmp.ne.s32.totalorder %s413_s2, %s278_s22  ;;  %s22_s19 = int_to_ptr.vmem [resolvable:$true] %s21_s19 }
   0x3   :  { %p282_p1 = scmp.lt.u32.totalorder %s278_s22, %s413_s2 }
   0x5   :  { %p284_p2 = pnand %p282_p1, %p279_p0 }
   0x7   :  { %287 = shalt.err (!%p284_p2)
}
   0x8   :  { %s288_s27 = scalar_lea.vmem %s22_s19, 512  ;;  %p293_p4 = scmp.lt.s32.totalorder %s22_s19, %s22_s19 }
   0x9   :  { %p289_p3 = scmp.ne.s32.totalorder %s22_s19, %s288_s27  ;;  %p294_p5 = scmp.lt.s32.totalorder %s288_s27, %s288_s27 }
   0xb   :  { %p295_p6 = por %p294_p5, %p293_p4 }
   0xd   :  { %p296_p7 = pnand %p295_p6, %p289_p3 }
   0xf   :  { %299 = shalt.err (!%p296_p7)
}
  0x10   :  { %s327_s28 = smov 64   ;;  %s328_s29 = smov 4  }
  0x11   :  { %27 = dma.hbm_to_vmem [thread:$0]  %s413_s2, 512, %s22_s19, [#allocation3], %s327_s28, %s327_s28, %s328_s29  }
  0x12   :  { %322 = dma.done.wait [#allocation3], 512  }
  0x13   :  { %323 = vsyncadd [#allocation3], 4294966784  ;;  %v329_v0 = vmov 0   ;;  %v330_v1 = vmov 0.0   ;;  %v123_v2 = vld [vmem:[%s412_s1] sm:$0xff]  ;;  %v124_v4 = vld [vmem:[%s412_s1 + $0x8] sm:$0xff]  ;;  %v125_v13 = vlaneseq }
  0x14   :  { %273 = vset.pattern.permute.xlu0 %v329_v0  ;;  %244 = vmatprep.subr.bf16.mxu1 %v330_v1  ;;  %v274_v3 = vld [vmem:[#allocation2] sm:$0xff]   ;;  %v275_v5 = vld [vmem:[#allocation2 + $0x8] sm:$0xff]   ;;  %vm331_vm0 = vmmov 0   ;;  %vm145_vm1 = vcmask 1043456   ;;  %v276_v8 = vld [vmem:[#allocation2 + $0x10] sm:$0xff]   ;;  %vm78_vm2 = vcmask 523264  }
  0x15   :  { %256 = vmatprep.subr.bf16.mxu0 %v330_v1  ;;  %128 = vperm.xlu0 %273, %v123_v2   ;;  %v140_v6 = vld [vmem:[%s415_s4] sm:$0xf]  ;;  %v277_v9 = vld [vmem:[#allocation2 + $0x18] sm:$0xff]   ;;  %v37_v11 = vld [vmem:[%s411_s0 + $0x8] sm:$0xff]  ;;  %v126_v14 = vand.u32 127, %v125_v13  ;;  %vm141_vm5 = vcmask 64512  }
  0x16   :  { %245 = vmatpush3.bf16.msra.mxu1 %v274_v3  ;;  %252 = vmatprep.mubr.msk.bf16.mxu1 %vm331_vm0, %v330_v1  ;;  %v147_v7 = vsel %vm145_vm1, %v140_v6, 0  ;;  %v36_v10 = vld [vmem:[%s411_s0] sm:$0xff]  ;;  %s332_s15 = smov [#allocation5]  }
  0x17   :  { %246 = vmatprep.subr.bf16.mxu1 %v330_v1  ;;  %258 = vmatprep.mubr.msk.bf16.mxu0 %vm331_vm0, %v330_v1  ;;  %v38_v12 = vpack.c.bf16 %v37_v11, %v36_v10  ;;  %v219_v24 = vld [vmem:[%s414_s3] ss:$0 sm:$0xff]  ;;  %s207_s16 = sshll.u32 %s332_s15, 4  ;;  %s208_s16 = int_to_ptr.vmem [resolvable:$true] %s207_s16 }
  0x18   :  { %257 = vmatpush3.bf16.msra.mxu0 %v147_v7  ;;  %s300_s17 = scalar_lea.vmem %s208_s16, 128  ;;  %p305_p9 = scmp.lt.s32.totalorder %s208_s16, %s208_s16 }
  0x19   :  { %131 = vperm.xlu0 %273, %v124_v4   ;;  %p301_p8 = scmp.ne.s32.totalorder %s208_s16, %s300_s17  ;;  %p306_p10 = scmp.lt.s32.totalorder %s300_s17, %s300_s17 }
  0x1a   :  { %247 = vmatpush3.bf16.msra.mxu1 %v275_v5 }
  0x1b   :  { %248 = vmatprep.subr.bf16.mxu1 %v330_v1  ;;  %p307_p11 = por %p306_p10, %p305_p9 }
  0x1d   :  { %p308_p12 = pnand %p307_p11, %p301_p8 }
  0x1e   :  { %249 = vmatpush3.bf16.msra.mxu1 %v276_v8 }
  0x1f   :  { %250 = vmatprep.subr.bf16.mxu1 %v330_v1 }
  0x22   :  { %251 = vmatpush3.bf16.msra.mxu1 %v277_v9 }
  0x25   :  { %253 = vmatmul.mubr.msk.bf16.vlgmr.msra.gmra.mrb[0].mxu1 %vm78_vm2, %v38_v12 }
  0x94   :  { %v129_v15 = vpop.permute.xlu0 %128 }
  0x95   :  { %vm133_vm3 = vcmp.eq.s32.totalorder %v126_v14, %v129_v15 }
  0x96   :  { %v225_v17 = vsel %vm133_vm3, 1.0, %v330_v1 }
  0x98   :  { %v132_v16 = vpop.permute.xlu0 %131 }
  0x99   :  { %vm134_vm4 = vcmp.eq.s32.totalorder %v126_v14, %v132_v16 }
  0x9a   :  { %v226_v18 = vsel %vm134_vm4, 1.0, %v330_v1 }
  0x9b   :  { %v139_v19 = vpack.c.bf16 %v226_v18, %v225_v17 }
  0x9d   :  { %259 = vmatmul.mubr.msk.bf16.vlgmr.msra.gmra.mrb[0].mxu0 %vm141_vm5, %v139_v19 }
  0xf8   :  { %v116_v20 = vpop.f32.mrb[0].mxu1 }
  0xf9   :  { %v254_v21 = vpop.f32.mrb[1].mxu1  ;;  %v117_v25 = vadd.f32 %v219_v24, %v116_v20 }
  0xfa   :  { %v119_v22 = vpop.f32.mrb[2].mxu1 }
  0xfb   :  { %v255_v23 = vpop.f32.mrb[3].mxu1  ;;  %v120_v27 = vadd.f32 %v219_v24, %v119_v22 }
 0x170   :  { %v183_v26 = vpop.f32.mrb[0].mxu0 }
 0x171   :  { %v190_v28 = vadd.f32 %v183_v26, %v117_v25  ;;  %v260_v29 = vpop.f32.mrb[1].mxu0 }
 0x172   :  { %v186_v30 = vpop.f32.mrb[2].mxu0 }
 0x173   :  { %v191_v31 = vadd.f32 %v186_v30, %v120_v27  ;;  %v261_v32 = vpop.f32.mrb[3].mxu0 }
 0x175   :  { %v235_v33 = vpack.c.bf16 %v191_v31, %v190_v28 }
 0x177   :  { %236 = vst [vmem:[#allocation5] sm:$0xff] %v235_v33  }
 0x178   :  { %311 = shalt.err (!%p308_p12)
}
 0x179   :  { %s312_s19 = scalar_lea.hbm %s416_s5, 128 }
 0x17a   :  { %p313_p13 = scmp.ne.s32.totalorder %s416_s5, %s312_s19  ;;  %p316_p0 = scmp.lt.u32.totalorder %s312_s19, %s416_s5 }
 0x17c   :  { %p318_p1 = pnand %p316_p0, %p313_p13 }
 0x17e   :  { %321 = shalt.err (!%p318_p1)
}
 0x17f   :  { %213 = dma.vmem_to_hbm [thread:$0]  %s208_s16, 128, %s416_s5, [#allocation4], %s327_s28, %s327_s28, %s328_s29  }
 0x180   :  { %324 = dma.done.wait [#allocation4], 128  }
 0x181   :  { %325 = vsyncadd [#allocation4], 4294967168 }
 0x182   :  { %217 = vsyncpa [#allocation3], 1 }
 0x183   :  { %218 = vsyncpa [#allocation4], 1 }

</bundles_post_ra>
